<compile_context>
chip_gen: v7x
topology: tpu7x:2x2x1
jax: 0.10.0
libtpu: 0.0.40
codegen_flags: <defaults>
</compile_context>

<pallas_src>
import functools

import jax
import jax.numpy as jnp
from jax.experimental import pallas as pl
from jax.experimental.pallas import tpu as pltpu


def fused_mlp_kernel(x_ref, w_ref, b_ref, o_ref):
    # Single MXU push: y = x @ W_fused + b_fused, then ReLU on the VPU.
    y = jnp.dot(x_ref[...], w_ref[...], preferred_element_type=jnp.float32)
    o_ref[...] = jnp.maximum(y + b_ref[...], 0.0).astype(o_ref.dtype)


def fuse_params(params):
    """Collapse the activation-free 3-layer chain into one affine map.

    Done once at parameter-setup time (NOT per forward call), using only
    right-multiplies so no per-call transposes are ever issued:
        W_fused = (W3 @ W2 @ W1)^T              # (in_dim, out_dim)
        b_fused = W3 @ (W2 @ b1 + b2) + b3      # (out_dim,)
    """
    w1, b1 = params["w1"], params["b1"]   # (hid, in),  (hid,)
    w2, b2 = params["w2"], params["b2"]   # (hid, hid), (hid,)
    w3, b3 = params["w3"], params["b3"]   # (out, hid), (out,)
    w_fused = (w3 @ (w2 @ w1)).T                      # (in_dim, out_dim)
    b_fused = (w3 @ (w2 @ b1 + b2) + b3).reshape(1, -1)  # (1, out_dim)
    return w_fused, b_fused


@functools.partial(jax.jit, static_argnames=("tile_b",))
def net_forward(x, w_fused, b_fused, *, tile_b=None):
    """Run the fused Net forward pass via a Pallas kernel.

    x:        (B, input_size) float32
    w_fused:  (input_size, output_size) float32
    b_fused:  (1, output_size) float32
    tile_b:   batch tile; None => whole batch in a single grid step (default,
              right choice at B=32).  For much larger batches pass a multiple
              of 8 so grid >= 2 and the 'parallel' batch axis can shard
              across v7x's two TensorCores.
    """
    B, in_dim = x.shape
    out_dim = w_fused.shape[1]
    tb = B if tile_b is None else tile_b
    assert B % tb == 0, "batch must be divisible by tile_b"

    grid = (B // tb,)
    return pl.pallas_call(
        fused_mlp_kernel,
        out_shape=jax.ShapeDtypeStruct((B, out_dim), jnp.float32),
        grid_spec=pltpu.PrefetchScalarGridSpec(
            num_scalar_prefetch=0,
            grid=grid,
            in_specs=[
                pl.BlockSpec((tb, in_dim), lambda i: (i, 0)),        # x tile
                pl.BlockSpec((in_dim, out_dim), lambda i: (0, 0)),   # fused W
                pl.BlockSpec((1, out_dim), lambda i: (0, 0)),        # fused b
            ],
            out_specs=pl.BlockSpec((tb, out_dim), lambda i: (i, 0)),
        ),
        compiler_params=pltpu.CompilerParams(
            dimension_semantics=("parallel",),
        ),
    )(x, w_fused, b_fused)


def init_params(key, input_size, hidden_dim, output_size):
    """Deterministic PyTorch-style (uniform +/- 1/sqrt(fan_in)) init."""
    ks = jax.random.split(key, 6)

    def lin(kw, kb, fan_in, fan_out):
        bound = 1.0 / jnp.sqrt(fan_in)
        w = jax.random.uniform(kw, (fan_out, fan_in), jnp.float32, -bound, bound)
        b = jax.random.uniform(kb, (fan_out,), jnp.float32, -bound, bound)
        return w, b

    w1, b1 = lin(ks[0], ks[1], input_size, hidden_dim)
    w2, b2 = lin(ks[2], ks[3], hidden_dim, hidden_dim)
    w3, b3 = lin(ks[4], ks[5], hidden_dim, output_size)
    return {"w1": w1, "b1": b1, "w2": w2, "b2": b2, "w3": w3, "b3": b3}


def net_forward_ref(x, p):
    """Pure-JAX reference mirroring the PyTorch forward exactly (unfused)."""
    x1 = x @ p["w1"].T + p["b1"]
    x2 = x1 @ p["w2"].T + p["b2"]
    x3 = x2 @ p["w3"].T + p["b3"]
    return jnp.maximum(x3, 0.0)


if __name__ == "__main__":
    key = jax.random.PRNGKey(0)
    k_x, k_p = jax.random.split(key)

    BATCH = 32          # matches BATCH_SIZE in the module
    INPUT_SIZE = 64
    HIDDEN_DIM = 32
    OUTPUT_SIZE = 16

    x = jax.random.normal(k_x, (BATCH, INPUT_SIZE), dtype=jnp.float32)
    params = init_params(k_p, INPUT_SIZE, HIDDEN_DIM, OUTPUT_SIZE)

    # One-time parameter fusion (cached; not on the per-call hot path).
    w_fused, b_fused = fuse_params(params)
    w_fused, b_fused = jax.block_until_ready((w_fused, b_fused))

    # TODO(synk): dropout modules and gradient-hook/tensorboard logging are
    # training-only and never affect this forward pass; not implemented.
    out = net_forward(x, w_fused, b_fused)
    out = jax.block_until_ready(out)

    ref = net_forward_ref(x, params)
    assert out.shape == (BATCH, OUTPUT_SIZE)
    # Fused affine map is mathematically identical to the 3-matmul chain;
    # only fp rounding differs, which stays well inside this tolerance.
    assert jnp.allclose(out, ref, atol=1e-5, rtol=1e-4), "mismatch vs reference"

    print("KERNEL_OK")
</pallas_src>

<mosaic_0001>
module attributes {stable_mosaic.version = 11 : i64} {
  func.func @fused_mlp_kernel(%arg0: i32, %arg1: memref<32x64xf32, #tpu.memory_space<vmem>>, %arg2: memref<64x16xf32, #tpu.memory_space<vmem>>, %arg3: memref<1x16xf32, #tpu.memory_space<vmem>>, %arg4: memref<32x16xf32, #tpu.memory_space<vmem>>) attributes {dimension_semantics = [#tpu.dimension_semantics<parallel>], iteration_bounds = array<i64: 1>, scalar_prefetch = 0 : i64, scratch_operands = 0 : i64, tpu.core_type = #tpu.core_type<tc>, window_params = [{transform_indices = @transform_0, window_bounds = array<i64: 32, 64>}, {pipeline_mode = #tpu.pipeline_mode<synchronous>, transform_indices = @transform_1, window_bounds = array<i64: 64, 16>}, {pipeline_mode = #tpu.pipeline_mode<synchronous>, transform_indices = @transform_2, window_bounds = array<i64: 1, 16>}, {transform_indices = @transform_3, window_bounds = array<i64: 32, 16>}]} {
    %c0 = arith.constant 0 : index
    %c0_0 = arith.constant 0 : index
    %0 = vector.load %arg1[%c0, %c0_0] : memref<32x64xf32, #tpu.memory_space<vmem>>, vector<32x64xf32>
    %c0_1 = arith.constant 0 : index
    %c0_2 = arith.constant 0 : index
    %1 = vector.load %arg2[%c0_1, %c0_2] : memref<64x16xf32, #tpu.memory_space<vmem>>, vector<64x16xf32>
    %cst = arith.constant dense<0.000000e+00> : vector<32x16xf32>
    %2 = tpu.matmul %0, %1, %cst {dimension_numbers = #tpu.dot_dimension_numbers<[1], [0], [0], [1], [0, 0, 1, 1], [], []>} : vector<32x64xf32>, vector<64x16xf32>, vector<32x16xf32> -> vector<32x16xf32>
    %c0_3 = arith.constant 0 : index
    %c0_4 = arith.constant 0 : index
    %3 = vector.load %arg3[%c0_3, %c0_4] : memref<1x16xf32, #tpu.memory_space<vmem>>, vector<1x16xf32>
    %4 = vector.broadcast %3 : vector<1x16xf32> to vector<32x16xf32>
    %5 = arith.addf %2, %4 : vector<32x16xf32>
    %cst_5 = arith.constant 0.000000e+00 : f32
    %6 = vector.broadcast %cst_5 : f32 to vector<32x16xf32>
    %7 = arith.maximumf %5, %6 : vector<32x16xf32>
    %c0_6 = arith.constant 0 : index
    %c0_7 = arith.constant 0 : index
    %8 = vector.load %arg4[%c0_6, %c0_7] : memref<32x16xf32, #tpu.memory_space<vmem>>, vector<32x16xf32>
    tpu.vector_store %arg4[%c0_6, %c0_7], %7 {strides = array<i32>} : memref<32x16xf32, #tpu.memory_space<vmem>>, vector<32x16xf32>,
    return
  }
  func.func @transform_0(%arg0: i32) -> (i32, i32) {
    %c0_i32 = arith.constant 0 : i32
    %c0_i32_0 = arith.constant 0 : i32
    return %arg0, %c0_i32 : i32, i32
  }
  func.func @transform_1(%arg0: i32) -> (i32, i32) {
    %c0_i32 = arith.constant 0 : i32
    %c0_i32_0 = arith.constant 0 : i32
    %c0_i32_1 = arith.constant 0 : i32
    return %c0_i32, %c0_i32_0 : i32, i32
  }
  func.func @transform_2(%arg0: i32) -> (i32, i32) {
    %c0_i32 = arith.constant 0 : i32
    %c0_i32_0 = arith.constant 0 : i32
    %c0_i32_1 = arith.constant 0 : i32
    return %c0_i32, %c0_i32_0 : i32, i32
  }
  func.func @transform_3(%arg0: i32) -> (i32, i32) {
    %c0_i32 = arith.constant 0 : i32
    %c0_i32_0 = arith.constant 0 : i32
    return %arg0, %c0_i32 : i32, i32
  }
}

</mosaic_0001>

<bundles_post_ra>
// kernel: net_forward.1
= control target key start
LH: loop header
LB: loop body
LE: loop exit
PB: predicated region body
PF: predicated region fallthrough
CT: control target
= control target key end

     0   :  { %vm33_vm0 = vcmask 523264   ;;  %vm135_vm1 = vcmask 130048   ;;  %s282_s1 = inlined_call_operand.vmem [shape: f32[64,16], index: 1, kind: input, shape index: {}]   ;;  %s283_s0 = inlined_call_operand.vmem [shape: f32[32,64], index: 0, kind: input, shape index: {}]   ;;  %s284_s2 = inlined_call_operand.vmem [shape: f32[1,16], index: 2, kind: input, shape index: {}]   ;;  %s285_s3 = inlined_call_operand.vmem [shape: f32[32,16], index: 3, kind: output, shape index: {}]  }
   0x1   :  { %v18_v0 = vld [vmem:[%s282_s1] sm:$0xff]  ;;  %v19_v1 = vld [vmem:[%s282_s1 + $0x8] sm:$0xff]  ;;  %v20_v2 = vld [vmem:[%s282_s1 + $0x10] sm:$0xff] }
   0x2   :  { %v183_v3 = vpack.c.bf16 %v19_v1, %v18_v0  ;;  %v21_v4 = vld [vmem:[%s282_s1 + $0x18] sm:$0xff]  ;;  %v22_v6 = vld [vmem:[%s282_s1 + $0x20] sm:$0xff]  ;;  %v23_v7 = vld [vmem:[%s282_s1 + $0x28] sm:$0xff] }
   0x3   :  { %v187_v5 = vpack.c.bf16 %v21_v4, %v20_v2  ;;  %v14_v8 = vld [vmem:[%s283_s0] sm:$0xff]  ;;  %v16_v9 = vld [vmem:[%s283_s0 + $0x10] sm:$0xff]  ;;  %v191_v10 = vpack.c.bf16 %v23_v7, %v22_v6  ;;  %v25_v12 = vld [vmem:[%s282_s1 + $0x38] sm:$0xff] }
   0x4   :  { %184 = vmatprep.subr.bf16.mxu0 %v183_v3  ;;  %199 = vmatprep.subr.bf16.mxu1 %v183_v3  ;;  %v24_v11 = vld [vmem:[%s282_s1 + $0x30] sm:$0xff]  ;;  %v15_v14 = vld [vmem:[%s283_s0 + $0x8] sm:$0xff]  ;;  %v17_v15 = vld [vmem:[%s283_s0 + $0x18] sm:$0xff] }
   0x5   :  { %186 = vmatpush3.bf16.msra.mxu0 %v183_v3  ;;  %203 = vmatpush3.bf16.msra.mxu1 %v183_v3  ;;  %v195_v13 = vpack.c.bf16 %v25_v12, %v24_v11  ;;  %v144_v16 = vld [vmem:[%s284_s2] ss:$0 sm:$0xff] }
   0x6   :  { %188 = vmatprep.subr.bf16.mxu0 %v187_v5  ;;  %200 = vmatprep.subr.bf16.mxu1 %v187_v5 }
   0x7   :  { %177 = vmatprep.mubr.msk.f32.mxu0 %vm33_vm0, %v14_v8  ;;  %180 = vmatprep.mubr.msk.f32.mxu1 %vm33_vm0, %v16_v9 }
   0x9   :  { %190 = vmatpush3.bf16.msra.mxu0 %v187_v5  ;;  %204 = vmatpush3.bf16.msra.mxu1 %v187_v5 }
   0xa   :  { %192 = vmatprep.subr.bf16.mxu0 %v191_v10  ;;  %201 = vmatprep.subr.bf16.mxu1 %v191_v10 }
   0xd   :  { %194 = vmatpush3.bf16.msra.mxu0 %v191_v10  ;;  %205 = vmatpush3.bf16.msra.mxu1 %v191_v10 }
   0xe   :  { %196 = vmatprep.subr.bf16.mxu0 %v195_v13  ;;  %202 = vmatprep.subr.bf16.mxu1 %v195_v13 }
  0x11   :  { %198 = vmatpush3.bf16.msra.mxu0 %v195_v13  ;;  %206 = vmatpush3.bf16.msra.mxu1 %v195_v13 }
  0x14   :  { %178 = vmatmul.mubr.msk.f32.vlgmr.msra.gmra.mrb[0].mxu0 %vm33_vm0, %v15_v14  ;;  %181 = vmatmul.mubr.msk.f32.vlgmr.msra.gmra.mrb[0].mxu1 %vm33_vm0, %v17_v15 }
  0xe7   :  { %v179_v17 = vpop.f32.mrb[0].mxu0  ;;  %v182_v18 = vpop.f32.mrb[0].mxu1 }
  0xe8   :  { %v118_v19 = vadd.f32 %v179_v17, %v144_v16  ;;  %v128_v20 = vadd.f32 %v182_v18, %v144_v16  ;;  %v112_v21 = vpop.f32.mrb[1].mxu0  ;;  %v122_v22 = vpop.f32.mrb[1].mxu1 }
  0xe9   :  { %v113_v23 = vadd.f32 %v144_v16, %v112_v21  ;;  %v123_v24 = vadd.f32 %v144_v16, %v122_v22 }
  0xea   :  { %v132_v25 = vmax.f32 %v118_v19, 0.0  ;;  %v134_v26 = vmax.f32 %v128_v20, 0.0 }
  0xeb   :  { %v131_v27 = vmax.f32 %v113_v23, 0.0  ;;  %v133_v28 = vmax.f32 %v123_v24, 0.0 }
  0xec   :  { %137 = vst.msk [vmem:[%s285_s3 + $0x8] sm:$0xff] %vm135_vm1, %v132_v25  ;;  %139 = vst.msk [vmem:[%s285_s3 + $0x18] sm:$0xff] %vm135_vm1, %v134_v26 }
  0xed   :  { %136 = vst.msk [vmem:[%s285_s3] sm:$0xff] %vm135_vm1, %v131_v27  ;;  %138 = vst.msk [vmem:[%s285_s3 + $0x10] sm:$0xff] %vm135_vm1, %v133_v28 }

</bundles_post_ra>
